<compile_context>
chip_gen: v5e
topology: v5e:2x2
jax: 0.10.0
libtpu: 0.0.40
codegen_flags: <defaults>
</compile_context>

<pallas_src>
import jax
import jax.numpy as jnp
import numpy as np
from jax.experimental import pallas as pl
from jax.experimental.pallas import tpu as pltpu


def _round_up(x, m):
    return ((x + m - 1) // m) * m


# ----------------------------------------------------------------------------
# Kernel: o = x @ W + b   (K-tiled matmul with resident f32 accumulator)
# ----------------------------------------------------------------------------
def linear_kernel(x_ref, w_ref, b_ref, o_ref, acc_ref):
    k = pl.program_id(2)

    @pl.when(k == 0)
    def _init():
        acc_ref[...] = jnp.zeros_like(acc_ref)

    acc_ref[...] += jnp.dot(x_ref[...], w_ref[...],
                            preferred_element_type=jnp.float32)

    @pl.when(k == pl.num_programs(2) - 1)
    def _finalize():
        # Bias add + cast in f32 (VPU work kept in f32 on all generations).
        o_ref[...] = (acc_ref[...] + b_ref[...]).astype(o_ref.dtype)


def sparse_input_linear(x, w, b, *, tm=1024, tn=512, tk=512, mxu_dtype=None,
                        vmem_limit_bytes=64 * 1024 * 1024):
    """y = x @ w + b via Pallas.  Handles arbitrary (non-tile-multiple) shapes."""
    M, K = x.shape
    K2, N = w.shape
    assert K == K2 and b.shape == (N,)

    # Respect the (8, 128) sublane/lane constraint; shrink tiles for small
    # problems so one block covers the (padded) dimension.
    tm = min(tm, _round_up(M, 8))
    tn = min(tn, _round_up(N, 128))
    tk = min(tk, _round_up(K, 128))

    Mp, Np, Kp = _round_up(M, tm), _round_up(N, tn), _round_up(K, tk)

    # Zero padding: zeros along K contribute nothing to the dot product; the
    # padded rows/cols of the output are sliced off below.
    if (Mp, Kp) != (M, K):
        x = jnp.pad(x, ((0, Mp - M), (0, Kp - K)))
    if (Kp, Np) != (K, N):
        w = jnp.pad(w, ((0, Kp - K), (0, Np - N)))
    b2 = jnp.pad(b, (0, Np - N)).reshape(1, Np)

    if mxu_dtype is not None:
        # bf16 MXU operands, f32 accumulation (halves streamed HBM bytes).
        x = x.astype(mxu_dtype)
        w = w.astype(mxu_dtype)

    grid = (Mp // tm, Np // tn, Kp // tk)   # reduction axis last

    out = pl.pallas_call(
        linear_kernel,
        out_shape=jax.ShapeDtypeStruct((Mp, Np), jnp.float32),
        grid_spec=pltpu.PrefetchScalarGridSpec(
            num_scalar_prefetch=0,
            grid=grid,
            in_specs=[
                pl.BlockSpec((tm, tk), lambda i, j, k: (i, k)),
                pl.BlockSpec((tk, tn), lambda i, j, k: (k, j)),
                pl.BlockSpec((1, tn), lambda i, j, k: (0, j)),
            ],
            out_specs=pl.BlockSpec((tm, tn), lambda i, j, k: (i, j)),
            scratch_shapes=[pltpu.VMEM((tm, tn), jnp.float32)],
        ),
        compiler_params=pltpu.CompilerParams(
            dimension_semantics=("parallel", "parallel", "arbitrary"),
            vmem_limit_bytes=vmem_limit_bytes),
    )(x, w, b2)

    return out[:M, :N]


if __name__ == "__main__":
    key = jax.random.PRNGKey(0)
    k1, k2, k3 = jax.random.split(key, 3)

    # Small, deliberately non-tile-aligned shapes to exercise padding/slicing.
    batch_rows, inp_dim, out_dim = 100, 72, 200

    # Same init scheme as the PyTorch module's reset_parameters().
    stdv = 1.0 / np.sqrt(out_dim)
    x = jax.random.normal(k1, (batch_rows, inp_dim), jnp.float32)
    w = jax.random.uniform(k2, (inp_dim, out_dim), jnp.float32, -stdv, stdv)
    b = jax.random.uniform(k3, (out_dim,), jnp.float32, -stdv, stdv)

    y = jax.block_until_ready(jax.jit(sparse_input_linear)(x, w, b))

    ref = x @ w + b
    np.testing.assert_allclose(np.asarray(y), np.asarray(ref),
                               rtol=1e-5, atol=1e-5)
    print("KERNEL_OK")
</pallas_src>

<mosaic_0001>
module attributes {stable_mosaic.version = 11 : i64} {
  func.func @linear_kernel(%arg0: i32, %arg1: i32, %arg2: i32, %arg3: memref<104x128xf32, #tpu.memory_space<vmem>>, %arg4: memref<128x256xf32, #tpu.memory_space<vmem>>, %arg5: memref<1x256xf32, #tpu.memory_space<vmem>>, %arg6: memref<104x256xf32, #tpu.memory_space<vmem>>, %arg7: memref<104x256xf32, #tpu.memory_space<vmem>>) attributes {dimension_semantics = [#tpu.dimension_semantics<parallel>, #tpu.dimension_semantics<parallel>, #tpu.dimension_semantics<arbitrary>], iteration_bounds = array<i64: 1, 1, 1>, scalar_prefetch = 0 : i64, scratch_operands = 1 : i64, tpu.core_type = #tpu.core_type<tc>, window_params = [{transform_indices = @transform_0, window_bounds = array<i64: 104, 128>}, {transform_indices = @transform_1, window_bounds = array<i64: 128, 256>}, {transform_indices = @transform_2, window_bounds = array<i64: 1, 256>}, {transform_indices = @transform_3, window_bounds = array<i64: 104, 256>}]} {
    %c0_i32 = arith.constant 0 : i32
    %0 = arith.cmpi eq, %arg2, %c0_i32 : i32
    %1 = arith.extui %0 : i1 to i32
    %c0_i32_0 = arith.constant 0 : i32
    %2 = arith.cmpi ne, %1, %c0_i32_0 : i32
    scf.if %2 {
      %cst_10 = arith.constant 0.000000e+00 : f32
      %12 = vector.broadcast %cst_10 : f32 to vector<104x256xf32>
      %c0_11 = arith.constant 0 : index
      %c0_12 = arith.constant 0 : index
      %13 = vector.load %arg7[%c0_11, %c0_12] : memref<104x256xf32, #tpu.memory_space<vmem>>, vector<104x256xf32>
      tpu.vector_store %arg7[%c0_11, %c0_12], %12 {strides = array<i32>} : memref<104x256xf32, #tpu.memory_space<vmem>>, vector<104x256xf32>,
    } else {
    }
    %c0 = arith.constant 0 : index
    %c0_1 = arith.constant 0 : index
    %3 = vector.load %arg7[%c0, %c0_1] : memref<104x256xf32, #tpu.memory_space<vmem>>, vector<104x256xf32>
    %c0_2 = arith.constant 0 : index
    %c0_3 = arith.constant 0 : index
    %4 = vector.load %arg3[%c0_2, %c0_3] : memref<104x128xf32, #tpu.memory_space<vmem>>, vector<104x128xf32>
    %c0_4 = arith.constant 0 : index
    %c0_5 = arith.constant 0 : index
    %5 = vector.load %arg4[%c0_4, %c0_5] : memref<128x256xf32, #tpu.memory_space<vmem>>, vector<128x256xf32>
    %cst = arith.constant dense<0.000000e+00> : vector<104x256xf32>
    %6 = tpu.matmul %4, %5, %cst {dimension_numbers = #tpu.dot_dimension_numbers<[1], [0], [0], [1], [0, 0, 1, 1], [], []>} : vector<104x128xf32>, vector<128x256xf32>, vector<104x256xf32> -> vector<104x256xf32>
    %7 = arith.addf %3, %6 : vector<104x256xf32>
    %c0_6 = arith.constant 0 : index
    %c0_7 = arith.constant 0 : index
    %8 = vector.load %arg7[%c0_6, %c0_7] : memref<104x256xf32, #tpu.memory_space<vmem>>, vector<104x256xf32>
    tpu.vector_store %arg7[%c0_6, %c0_7], %7 {strides = array<i32>} : memref<104x256xf32, #tpu.memory_space<vmem>>, vector<104x256xf32>,
    %c0_i32_8 = arith.constant 0 : i32
    %9 = arith.cmpi eq, %arg2, %c0_i32_8 : i32
    %10 = arith.extui %9 : i1 to i32
    %c0_i32_9 = arith.constant 0 : i32
    %11 = arith.cmpi ne, %10, %c0_i32_9 : i32
    scf.if %11 {
      %c0_10 = arith.constant 0 : index
      %c0_11 = arith.constant 0 : index
      %12 = vector.load %arg7[%c0_10, %c0_11] : memref<104x256xf32, #tpu.memory_space<vmem>>, vector<104x256xf32>
      %c0_12 = arith.constant 0 : index
      %c0_13 = arith.constant 0 : index
      %13 = vector.load %arg5[%c0_12, %c0_13] : memref<1x256xf32, #tpu.memory_space<vmem>>, vector<1x256xf32>
      %14 = vector.broadcast %13 : vector<1x256xf32> to vector<104x256xf32>
      %15 = arith.addf %12, %14 : vector<104x256xf32>
      %c0_14 = arith.constant 0 : index
      %c0_15 = arith.constant 0 : index
      %16 = vector.load %arg6[%c0_14, %c0_15] : memref<104x256xf32, #tpu.memory_space<vmem>>, vector<104x256xf32>
      tpu.vector_store %arg6[%c0_14, %c0_15], %15 {strides = array<i32>} : memref<104x256xf32, #tpu.memory_space<vmem>>, vector<104x256xf32>,
    } else {
    }
    return
  }
  func.func @transform_0(%arg0: i32, %arg1: i32, %arg2: i32) -> (i32, i32) {
    %c0_i32 = arith.constant 0 : i32
    return %arg0, %arg2 : i32, i32
  }
  func.func @transform_1(%arg0: i32, %arg1: i32, %arg2: i32) -> (i32, i32) {
    %c0_i32 = arith.constant 0 : i32
    return %arg2, %arg1 : i32, i32
  }
  func.func @transform_2(%arg0: i32, %arg1: i32, %arg2: i32) -> (i32, i32) {
    %c0_i32 = arith.constant 0 : i32
    %c0_i32_0 = arith.constant 0 : i32
    return %c0_i32, %arg1 : i32, i32
  }
  func.func @transform_3(%arg0: i32, %arg1: i32, %arg2: i32) -> (i32, i32) {
    %c0_i32 = arith.constant 0 : i32
    return %arg0, %arg1 : i32, i32
  }
}

</mosaic_0001>

<bundles_post_ra>
// kernel: sparse_input_linear.1
= control target key start
LH: loop header
LB: loop body
LE: loop exit
PB: predicated region body
PF: predicated region fallthrough
CT: control target
= control target key end

     0   :  { %s668_s1 = inlined_call_operand.vmem [shape: f32[128,256], index: 1, kind: input, shape index: {}]   ;;  %s669_s0 = inlined_call_operand.vmem [shape: f32[104,128], index: 0, kind: input, shape index: {}]   ;;  %s670_s2 = inlined_call_operand.vmem [shape: f32[1,256], index: 2, kind: input, shape index: {}]   ;;  %s671_s3 = inlined_call_operand.vmem [shape: f32[104,256], index: 3, kind: output, shape index: {}]  }
   0x1   :  { %v113_v0 = vld [vmem:[%s668_s1 + $0xf0] sm:$0xff]  ;;  %v111_v1 = vld [vmem:[%s668_s1 + $0xe0] sm:$0xff]  ;;  %v114_v2 = vld [vmem:[%s668_s1 + $0xf8] sm:$0xff] }
   0x2   :  { %370 = vmatpush.msra.mxu2 %v113_v0  ;;  %115 = vmatpush.msra.mxu0 %v113_v0  ;;  %v109_v3 = vld [vmem:[%s668_s1 + $0xd0] sm:$0xff]  ;;  %v112_v4 = vld [vmem:[%s668_s1 + $0xe8] sm:$0xff]  ;;  %v110_v5 = vld [vmem:[%s668_s1 + $0xd8] sm:$0xff] }
   0x3   :  { %171 = vmatpush.msra.mxu1 %v114_v2  ;;  %386 = vmatpush.msra.mxu3 %v114_v2  ;;  %v107_v6 = vld [vmem:[%s668_s1 + $0xc0] sm:$0xff]  ;;  %v108_v7 = vld [vmem:[%s668_s1 + $0xc8] sm:$0xff]  ;;  %v105_v8 = vld [vmem:[%s668_s1 + $0xb0] sm:$0xff] }
   0x4   :  { %371 = vmatpush.msra.mxu2 %v111_v1  ;;  %116 = vmatpush.msra.mxu0 %v111_v1  ;;  %v106_v9 = vld [vmem:[%s668_s1 + $0xb8] sm:$0xff]  ;;  %v103_v10 = vld [vmem:[%s668_s1 + $0xa0] sm:$0xff]  ;;  %v104_v11 = vld [vmem:[%s668_s1 + $0xa8] sm:$0xff] }
   0x5   :  { %172 = vmatpush.msra.mxu1 %v112_v4  ;;  %387 = vmatpush.msra.mxu3 %v112_v4  ;;  %v101_v12 = vld [vmem:[%s668_s1 + $0x90] sm:$0xff]  ;;  %v102_v13 = vld [vmem:[%s668_s1 + $0x98] sm:$0xff]  ;;  %v99_v14 = vld [vmem:[%s668_s1 + $0x80] sm:$0xff] }
   0x6   :  { %372 = vmatpush.msra.mxu2 %v109_v3  ;;  %117 = vmatpush.msra.mxu0 %v109_v3  ;;  %v100_v15 = vld [vmem:[%s668_s1 + $0x88] sm:$0xff]  ;;  %v97_v16 = vld [vmem:[%s668_s1 + $0x70] sm:$0xff]  ;;  %v98_v17 = vld [vmem:[%s668_s1 + $0x78] sm:$0xff] }
   0x7   :  { %173 = vmatpush.msra.mxu1 %v110_v5  ;;  %388 = vmatpush.msra.mxu3 %v110_v5  ;;  %v95_v18 = vld [vmem:[%s668_s1 + $0x60] sm:$0xff]  ;;  %v96_v19 = vld [vmem:[%s668_s1 + $0x68] sm:$0xff]  ;;  %v93_v20 = vld [vmem:[%s668_s1 + $0x50] sm:$0xff] }
   0x8   :  { %373 = vmatpush.msra.mxu2 %v107_v6  ;;  %118 = vmatpush.msra.mxu0 %v107_v6  ;;  %v94_v21 = vld [vmem:[%s668_s1 + $0x58] sm:$0xff]  ;;  %v91_v22 = vld [vmem:[%s668_s1 + $0x40] sm:$0xff]  ;;  %v92_v23 = vld [vmem:[%s668_s1 + $0x48] sm:$0xff] }
   0x9   :  { %174 = vmatpush.msra.mxu1 %v108_v7  ;;  %389 = vmatpush.msra.mxu3 %v108_v7  ;;  %v89_v24 = vld [vmem:[%s668_s1 + $0x30] sm:$0xff]  ;;  %v90_v25 = vld [vmem:[%s668_s1 + $0x38] sm:$0xff]  ;;  %v87_v26 = vld [vmem:[%s668_s1 + $0x20] sm:$0xff] }
   0xa   :  { %374 = vmatpush.msra.mxu2 %v105_v8  ;;  %119 = vmatpush.msra.mxu0 %v105_v8  ;;  %v88_v27 = vld [vmem:[%s668_s1 + $0x28] sm:$0xff]  ;;  %v85_v28 = vld [vmem:[%s668_s1 + $0x10] sm:$0xff]  ;;  %v86_v29 = vld [vmem:[%s668_s1 + $0x18] sm:$0xff] }
   0xb   :  { %175 = vmatpush.msra.mxu1 %v106_v9  ;;  %390 = vmatpush.msra.mxu3 %v106_v9  ;;  %v83_v30 = vld [vmem:[%s668_s1] sm:$0xff]  ;;  %v76_v31 = vld [vmem:[%s669_s0 + $0x30] sm:$0xff]  ;;  %v84_v32 = vld [vmem:[%s668_s1 + $0x8] sm:$0xff] }
   0xc   :  { %375 = vmatpush.msra.mxu2 %v103_v10  ;;  %120 = vmatpush.msra.mxu0 %v103_v10  ;;  %v70_v33 = vld [vmem:[%s669_s0] sm:$0xff]  ;;  %v77_v34 = vld [vmem:[%s669_s0 + $0x38] sm:$0xff]  ;;  %v71_v35 = vld [vmem:[%s669_s0 + $0x8] sm:$0xff] }
   0xd   :  { %176 = vmatpush.msra.mxu1 %v104_v11  ;;  %391 = vmatpush.msra.mxu3 %v104_v11  ;;  %v78_v36 = vld [vmem:[%s669_s0 + $0x40] sm:$0xff]  ;;  %v72_v37 = vld [vmem:[%s669_s0 + $0x10] sm:$0xff]  ;;  %v79_v38 = vld [vmem:[%s669_s0 + $0x48] sm:$0xff] }
   0xe   :  { %376 = vmatpush.msra.mxu2 %v101_v12  ;;  %121 = vmatpush.msra.mxu0 %v101_v12  ;;  %v73_v39 = vld [vmem:[%s669_s0 + $0x18] sm:$0xff]  ;;  %v80_v40 = vld [vmem:[%s669_s0 + $0x50] sm:$0xff]  ;;  %v74_v41 = vld [vmem:[%s669_s0 + $0x20] sm:$0xff] }
   0xf   :  { %177 = vmatpush.msra.mxu1 %v102_v13  ;;  %392 = vmatpush.msra.mxu3 %v102_v13  ;;  %v81_v42 = vld [vmem:[%s669_s0 + $0x58] sm:$0xff]  ;;  %v75_v43 = vld [vmem:[%s669_s0 + $0x28] sm:$0xff]  ;;  %v82_v44 = vld [vmem:[%s669_s0 + $0x60] sm:$0xff] }
  0x10   :  { %377 = vmatpush.msra.mxu2 %v99_v14  ;;  %122 = vmatpush.msra.mxu0 %v99_v14  ;;  %v308_v45 = vld [vmem:[%s670_s2] sm:$0x3] }
  0x11   :  { %178 = vmatpush.msra.mxu1 %v100_v15  ;;  %393 = vmatpush.msra.mxu3 %v100_v15  ;;  %v560_v46 = vperm.slane %v308_v45, 1  ;;  %v562_v47 = vperm.slane %v308_v45, 0 }
  0x12   :  { %378 = vmatpush.msra.mxu2 %v97_v16  ;;  %123 = vmatpush.msra.mxu0 %v97_v16 }
  0x13   :  { %179 = vmatpush.msra.mxu1 %v98_v17  ;;  %394 = vmatpush.msra.mxu3 %v98_v17 }
  0x14   :  { %379 = vmatpush.msra.mxu2 %v95_v18  ;;  %124 = vmatpush.msra.mxu0 %v95_v18 }
  0x15   :  { %180 = vmatpush.msra.mxu1 %v96_v19  ;;  %395 = vmatpush.msra.mxu3 %v96_v19 }
  0x16   :  { %380 = vmatpush.msra.mxu2 %v93_v20  ;;  %125 = vmatpush.msra.mxu0 %v93_v20 }
  0x17   :  { %181 = vmatpush.msra.mxu1 %v94_v21  ;;  %396 = vmatpush.msra.mxu3 %v94_v21 }
  0x18   :  { %381 = vmatpush.msra.mxu2 %v91_v22  ;;  %126 = vmatpush.msra.mxu0 %v91_v22 }
  0x19   :  { %182 = vmatpush.msra.mxu1 %v92_v23  ;;  %397 = vmatpush.msra.mxu3 %v92_v23 }
  0x1a   :  { %382 = vmatpush.msra.mxu2 %v89_v24  ;;  %127 = vmatpush.msra.mxu0 %v89_v24 }
  0x1b   :  { %183 = vmatpush.msra.mxu1 %v90_v25  ;;  %398 = vmatpush.msra.mxu3 %v90_v25 }
  0x1c   :  { %383 = vmatpush.msra.mxu2 %v87_v26  ;;  %128 = vmatpush.msra.mxu0 %v87_v26 }
  0x1d   :  { %184 = vmatpush.msra.mxu1 %v88_v27  ;;  %399 = vmatpush.msra.mxu3 %v88_v27 }
  0x1e   :  { %384 = vmatpush.msra.mxu2 %v85_v28  ;;  %129 = vmatpush.msra.mxu0 %v85_v28 }
  0x1f   :  { %185 = vmatpush.msra.mxu1 %v86_v29  ;;  %400 = vmatpush.msra.mxu3 %v86_v29 }
  0x20   :  { %385 = vmatpush.msra.mxu2 %v83_v30  ;;  %130 = vmatpush.msra.mxu0 %v83_v30 }
  0x21   :  { %149 = vmatmul.f32.vlgmr.msra.gmra.mxu2 %v76_v31  ;;  %186 = vmatpush.msra.mxu1 %v84_v32 }
  0x22   :  { %187 = vmatmul.f32.vlgmr.msra.gmra.mxu1 %v70_v33  ;;  %401 = vmatpush.msra.mxu3 %v84_v32 }
  0x23   :  { %208 = vmatmul.f32.vlgmr.msra.gmra.mxu3 %v77_v34  ;;  %131 = vmatmul.f32.vlgmr.msra.gmra.mxu0 %v70_v33 }
  0x29   :  { %152 = vmatmul.f32.gmra.mxu2 %v77_v34 }
  0x2a   :  { %190 = vmatmul.f32.gmra.mxu1 %v71_v35 }
  0x2b   :  { %211 = vmatmul.f32.gmra.mxu3 %v78_v36  ;;  %134 = vmatmul.f32.gmra.mxu0 %v71_v35 }
  0x31   :  { %155 = vmatmul.f32.gmra.mxu2 %v78_v36 }
  0x32   :  { %193 = vmatmul.f32.gmra.mxu1 %v72_v37 }
  0x33   :  { %214 = vmatmul.f32.gmra.mxu3 %v79_v38  ;;  %137 = vmatmul.f32.gmra.mxu0 %v72_v37 }
  0x39   :  { %158 = vmatmul.f32.gmra.mxu2 %v79_v38 }
  0x3a   :  { %196 = vmatmul.f32.gmra.mxu1 %v73_v39 }
  0x3b   :  { %217 = vmatmul.f32.gmra.mxu3 %v80_v40  ;;  %140 = vmatmul.f32.gmra.mxu0 %v73_v39 }
  0x41   :  { %161 = vmatmul.f32.gmra.mxu2 %v80_v40 }
  0x42   :  { %199 = vmatmul.f32.gmra.mxu1 %v74_v41 }
  0x43   :  { %220 = vmatmul.f32.gmra.mxu3 %v81_v42  ;;  %143 = vmatmul.f32.gmra.mxu0 %v74_v41 }
  0x49   :  { %164 = vmatmul.f32.gmra.mxu2 %v81_v42 }
  0x4a   :  { %202 = vmatmul.f32.gmra.mxu1 %v75_v43 }
  0x4b   :  { %223 = vmatmul.f32.gmra.mxu3 %v82_v44  ;;  %146 = vmatmul.f32.gmra.mxu0 %v75_v43 }
  0x51   :  { %167 = vmatmul.f32.gmra.mxu2 %v82_v44 }
  0x52   :  { %205 = vmatmul.f32.gmra.mxu1 %v76_v31 }
  0x9f   :  { %v188_v48 = vpop.f32.mrf.mxu1 }
  0xa0   :  { %v315_v49 = vadd.f32 %v560_v46, %v188_v48  ;;  %v132_v50 = vpop.f32.mrf.mxu0 }
  0xa1   :  { %v314_v51 = vadd.f32 %v562_v47, %v132_v50 }
  0xa2   :  { %341 = vst [vmem:[%s671_s3 + $0x8] sm:$0xff] %v315_v49 }
  0xa3   :  { %340 = vst [vmem:[%s671_s3] sm:$0xff] %v314_v51 }
  0xa4   :  { %v150_v52 = vpop.f32.mrf.mxu2 }
  0xa5   :  { %v326_v53 = vadd.f32 %v562_v47, %v150_v52 }
  0xa6   :  { %v209_v54 = vpop.f32.mrf.mxu3 }
  0xa7   :  { %352 = vst [vmem:[%s671_s3 + $0x60] sm:$0xff] %v326_v53  ;;  %v191_v55 = vpop.f32.mrf.mxu1  ;;  %v329_v56 = vadd.f32 %v560_v46, %v209_v54 }
  0xa8   :  { %v317_v57 = vadd.f32 %v560_v46, %v191_v55  ;;  %v135_v58 = vpop.f32.mrf.mxu0 }
  0xa9   :  { %355 = vst [vmem:[%s671_s3 + $0x78] sm:$0xff] %v329_v56  ;;  %v316_v59 = vadd.f32 %v562_v47, %v135_v58 }
  0xaa   :  { %343 = vst [vmem:[%s671_s3 + $0x18] sm:$0xff] %v317_v57 }
  0xab   :  { %342 = vst [vmem:[%s671_s3 + $0x10] sm:$0xff] %v316_v59 }
  0xac   :  { %v153_v60 = vpop.f32.mrf.mxu2 }
  0xad   :  { %v328_v61 = vadd.f32 %v562_v47, %v153_v60 }
  0xae   :  { %v212_v62 = vpop.f32.mrf.mxu3 }
  0xaf   :  { %354 = vst [vmem:[%s671_s3 + $0x70] sm:$0xff] %v328_v61  ;;  %v194_v63 = vpop.f32.mrf.mxu1  ;;  %v331_v0 = vadd.f32 %v560_v46, %v212_v62 }
  0xb0   :  { %v319_v1 = vadd.f32 %v560_v46, %v194_v63  ;;  %v138_v2 = vpop.f32.mrf.mxu0 }
  0xb1   :  { %357 = vst [vmem:[%s671_s3 + $0x88] sm:$0xff] %v331_v0  ;;  %v318_v3 = vadd.f32 %v562_v47, %v138_v2 }
  0xb2   :  { %345 = vst [vmem:[%s671_s3 + $0x28] sm:$0xff] %v319_v1 }
  0xb3   :  { %344 = vst [vmem:[%s671_s3 + $0x20] sm:$0xff] %v318_v3 }
  0xb4   :  { %v156_v4 = vpop.f32.mrf.mxu2 }
  0xb5   :  { %v330_v5 = vadd.f32 %v562_v47, %v156_v4 }
  0xb6   :  { %v215_v6 = vpop.f32.mrf.mxu3 }
  0xb7   :  { %356 = vst [vmem:[%s671_s3 + $0x80] sm:$0xff] %v330_v5  ;;  %v197_v7 = vpop.f32.mrf.mxu1  ;;  %v333_v8 = vadd.f32 %v560_v46, %v215_v6 }
  0xb8   :  { %v321_v9 = vadd.f32 %v560_v46, %v197_v7  ;;  %v141_v10 = vpop.f32.mrf.mxu0 }
  0xb9   :  { %359 = vst [vmem:[%s671_s3 + $0x98] sm:$0xff] %v333_v8  ;;  %v320_v11 = vadd.f32 %v562_v47, %v141_v10 }
  0xba   :  { %347 = vst [vmem:[%s671_s3 + $0x38] sm:$0xff] %v321_v9 }
  0xbb   :  { %346 = vst [vmem:[%s671_s3 + $0x30] sm:$0xff] %v320_v11 }
  0xbc   :  { %v159_v12 = vpop.f32.mrf.mxu2 }
  0xbd   :  { %v332_v13 = vadd.f32 %v562_v47, %v159_v12 }
  0xbe   :  { %v218_v14 = vpop.f32.mrf.mxu3 }
  0xbf   :  { %358 = vst [vmem:[%s671_s3 + $0x90] sm:$0xff] %v332_v13  ;;  %v200_v15 = vpop.f32.mrf.mxu1  ;;  %v335_v16 = vadd.f32 %v560_v46, %v218_v14 }
  0xc0   :  { %v323_v17 = vadd.f32 %v560_v46, %v200_v15  ;;  %v144_v18 = vpop.f32.mrf.mxu0 }
  0xc1   :  { %361 = vst [vmem:[%s671_s3 + $0xa8] sm:$0xff] %v335_v16  ;;  %v322_v19 = vadd.f32 %v562_v47, %v144_v18 }
  0xc2   :  { %349 = vst [vmem:[%s671_s3 + $0x48] sm:$0xff] %v323_v17 }
  0xc3   :  { %348 = vst [vmem:[%s671_s3 + $0x40] sm:$0xff] %v322_v19 }
  0xc4   :  { %v162_v20 = vpop.f32.mrf.mxu2 }
  0xc5   :  { %v334_v21 = vadd.f32 %v562_v47, %v162_v20 }
  0xc6   :  { %v221_v22 = vpop.f32.mrf.mxu3 }
  0xc7   :  { %360 = vst [vmem:[%s671_s3 + $0xa0] sm:$0xff] %v334_v21  ;;  %v203_v23 = vpop.f32.mrf.mxu1  ;;  %v337_v24 = vadd.f32 %v560_v46, %v221_v22 }
  0xc8   :  { %v325_v25 = vadd.f32 %v560_v46, %v203_v23  ;;  %v147_v26 = vpop.f32.mrf.mxu0 }
  0xc9   :  { %363 = vst [vmem:[%s671_s3 + $0xb8] sm:$0xff] %v337_v24  ;;  %v324_v27 = vadd.f32 %v562_v47, %v147_v26 }
  0xca   :  { %351 = vst [vmem:[%s671_s3 + $0x58] sm:$0xff] %v325_v25 }
  0xcb   :  { %350 = vst [vmem:[%s671_s3 + $0x50] sm:$0xff] %v324_v27 }
  0xcc   :  { %v165_v28 = vpop.f32.mrf.mxu2 }
  0xcd   :  { %v336_v29 = vadd.f32 %v562_v47, %v165_v28 }
  0xce   :  { %v224_v30 = vpop.f32.mrf.mxu3 }
  0xcf   :  { %362 = vst [vmem:[%s671_s3 + $0xb0] sm:$0xff] %v336_v29  ;;  %v206_v31 = vpop.f32.mrf.mxu1  ;;  %v339_v32 = vadd.f32 %v560_v46, %v224_v30 }
  0xd0   :  { %v327_v33 = vadd.f32 %v560_v46, %v206_v31 }
  0xd1   :  { %365 = vst [vmem:[%s671_s3 + $0xc8] sm:$0xff] %v339_v32 }
  0xd2   :  { %353 = vst [vmem:[%s671_s3 + $0x68] sm:$0xff] %v327_v33 }
  0xd4   :  { %v168_v34 = vpop.f32.mrf.mxu2 }
  0xd5   :  { %v338_v35 = vadd.f32 %v562_v47, %v168_v34 }
  0xd7   :  { %364 = vst [vmem:[%s671_s3 + $0xc0] sm:$0xff] %v338_v35 }

</bundles_post_ra>
